<compile_context>
chip_gen: v7x
topology: tpu7x:2x2x1
jax: 0.10.0
libtpu: 0.0.40
codegen_flags: <defaults>
</compile_context>

<pallas_src>
import functools

import jax
import jax.numpy as jnp
from jax import lax
from jax.experimental import pallas as pl
from jax.experimental.pallas import tpu as pltpu


def _self_attn_kernel(xq_ref, q_ref, k_ref, v_ref, gamma_ref, out_ref, attn_ref):
    x_q = xq_ref[0]                     # (C, TQ)   f32  (exact, for residual)
    q = q_ref[0]                        # (C8p, TQ) bf16
    k = k_ref[0]                        # (C8p, N)  bf16
    v = v_ref[0]                        # (C, N)    bf16

    # energy[i, j] = sum_o q[o, i] * k[o, j]  (transposed contraction, no .T)
    energy = lax.dot_general(q, k, (((0,), (0,)), ((), ())),
                             preferred_element_type=jnp.float32)      # (TQ, N)

    # Numerically stable softmax over keys, in f32; exact reciprocal for the
    # attention matrix that is returned to the caller.
    m = jnp.max(energy, axis=-1, keepdims=True)
    p = jnp.exp(energy - m)
    denom = jnp.sum(p, axis=-1, keepdims=True)
    attn = p * (1.0 / denom)                                          # (TQ, N)
    attn_ref[0] = attn

    # out[c, i] = sum_j v[c, j] * attn[i, j]  (rhs-transposed contraction)
    out = lax.dot_general(v, attn.astype(jnp.bfloat16),
                          (((1,), (1,)), ((), ())),
                          preferred_element_type=jnp.float32)         # (C, TQ)

    out_ref[0] = gamma_ref[0, 0] * out + x_q


def _round_up(x, m):
    return (x + m - 1) // m * m


@functools.partial(jax.jit, static_argnames=("tile_q",))
def self_attn_forward(x_nchw, wq, wk, wv, bq, bk, bv, gamma, *, tile_q=128):
    """SAGAN Self_Attn forward.

    x_nchw: (B, C, W, H) f32. wq/wk: (C//8, C), wv: (C, C) torch conv (out, in)
    layout; bq/bk: (C//8,), bv: (C,), gamma: (1,).
    Returns (out (B, C, W, H) f32, attention (B, N, N) f32), N = W*H.
    """
    B, C, W, H = x_nchw.shape
    N = W * H
    C8 = wq.shape[0]

    x_flat = x_nchw.reshape(B, C, N).astype(jnp.float32)    # free reshape

    # --- Projections hoisted out of the kernel: computed once per batch. ---
    f32 = jnp.float32
    q = jnp.einsum("oc,bcn->bon", wq.astype(f32), x_flat) + bq.astype(f32)[None, :, None]
    k = jnp.einsum("oc,bcn->bon", wk.astype(f32), x_flat) + bk.astype(f32)[None, :, None]
    v = jnp.einsum("oc,bcn->bon", wv.astype(f32), x_flat) + bv.astype(f32)[None, :, None]

    # Pad the C//8 projection width to a bf16-sublane-friendly multiple of 16;
    # padded rows are exactly zero so energy is unchanged.
    C8p = _round_up(max(C8, 1), 16)
    q = jnp.pad(q, ((0, 0), (0, C8p - C8), (0, 0)))
    k = jnp.pad(k, ((0, 0), (0, C8p - C8), (0, 0)))

    # --- Query tiling: pad the QUERY axis (never the key axis) to TQ. ---
    if N >= tile_q:
        TQ = tile_q
        Np = _round_up(N, TQ)
    else:
        TQ = N
        Np = N
    if Np != N:
        pad_q = ((0, 0), (0, 0), (0, Np - N))
        x_q_in = jnp.pad(x_flat, pad_q)
        q = jnp.pad(q, pad_q)
    else:
        x_q_in = x_flat

    q_b = q.astype(jnp.bfloat16)                            # (B, C8p, Np)
    k_b = k.astype(jnp.bfloat16)                            # (B, C8p, N)
    v_b = v.astype(jnp.bfloat16)                            # (B, C,   N)
    gamma2d = jnp.asarray(gamma, jnp.float32).reshape(1, 1)

    grid = (B, Np // TQ)

    grid_spec = pltpu.PrefetchScalarGridSpec(
        num_scalar_prefetch=0,
        grid=grid,
        in_specs=[
            pl.BlockSpec((1, C, TQ),   lambda b, qt: (b, 0, qt)),   # x query tile (f32)
            pl.BlockSpec((1, C8p, TQ), lambda b, qt: (b, 0, qt)),   # q tile (bf16)
            pl.BlockSpec((1, C8p, N),  lambda b, qt: (b, 0, 0)),    # k full (bf16, fetched once/batch)
            pl.BlockSpec((1, C, N),    lambda b, qt: (b, 0, 0)),    # v full (bf16, fetched once/batch)
            pl.BlockSpec((1, 1),       lambda b, qt: (0, 0)),       # gamma
        ],
        out_specs=[
            pl.BlockSpec((1, C, TQ),   lambda b, qt: (b, 0, qt)),   # out (B, C, Np)
            pl.BlockSpec((1, TQ, N),   lambda b, qt: (b, qt, 0)),   # attn (B, Np, N)
        ],
    )

    out_flat, attn = pl.pallas_call(
        _self_attn_kernel,
        out_shape=(
            jax.ShapeDtypeStruct((B, C, Np), jnp.float32),
            jax.ShapeDtypeStruct((B, Np, N), jnp.float32),
        ),
        grid_spec=grid_spec,
        compiler_params=pltpu.CompilerParams(
            dimension_semantics=("parallel", "parallel"),
            vmem_limit_bytes=64 * 1024 * 1024),
    )(x_q_in, q_b, k_b, v_b, gamma2d)

    if Np != N:
        out_flat = out_flat[:, :, :N]
        attn = attn[:, :N, :]

    out = out_flat.reshape(B, C, W, H)       # free reshape, no transpose
    return out, attn


def _reference(x, wq, wk, wv, bq, bk, bv, gamma):
    """Pure-jnp f32 reference mirroring the torch forward."""
    B, C, W, H = x.shape
    N = W * H
    xf = x.reshape(B, C, N)
    q = jnp.einsum("oc,bcn->bon", wq, xf) + bq[None, :, None]   # (B, C8, N)
    k = jnp.einsum("oc,bcn->bon", wk, xf) + bk[None, :, None]   # (B, C8, N)
    v = jnp.einsum("oc,bcn->bon", wv, xf) + bv[None, :, None]   # (B, C,  N)
    energy = jnp.einsum("boi,boj->bij", q, k)                   # (B, N, N)
    attn = jax.nn.softmax(energy, axis=-1)
    out = jnp.einsum("bcj,bij->bci", v, attn).reshape(B, C, W, H)
    return gamma * out + x, attn


if __name__ == "__main__":
    # Small shapes consistent with the module (in_dim >= 8 so in_dim // 8 >= 1).
    B, C, W, H = 2, 32, 16, 16          # N = 256 -> two 128-row query tiles
    C8 = C // 8

    key = jax.random.PRNGKey(0)
    k_x, k_wq, k_wk, k_wv, k_bq, k_bk, k_bv = jax.random.split(key, 7)

    x = jax.random.normal(k_x, (B, C, W, H), dtype=jnp.float32)
    wq = jax.random.normal(k_wq, (C8, C), dtype=jnp.float32) * 0.1
    wk = jax.random.normal(k_wk, (C8, C), dtype=jnp.float32) * 0.1
    wv = jax.random.normal(k_wv, (C, C), dtype=jnp.float32) * 0.1
    bq = jax.random.normal(k_bq, (C8,), dtype=jnp.float32) * 0.1
    bk = jax.random.normal(k_bk, (C8,), dtype=jnp.float32) * 0.1
    bv = jax.random.normal(k_bv, (C,), dtype=jnp.float32) * 0.1
    # Module initializes gamma = 0; use a nonzero value here so the attention
    # path actually contributes to `out` in the check.
    gamma = jnp.full((1,), 0.5, dtype=jnp.float32)

    out, attn = self_attn_forward(x, wq, wk, wv, bq, bk, bv, gamma)
    out, attn = jax.block_until_ready((out, attn))

    ref_out, ref_attn = _reference(x, wq, wk, wv, bq, bk, bv, gamma[0])
    assert out.shape == (B, C, W, H) and attn.shape == (B, W * H, W * H)
    # bf16 MXU operands => slightly looser tolerances than a pure-f32 compare.
    assert jnp.allclose(attn, ref_attn, atol=2e-2, rtol=0.0), \
        float(jnp.max(jnp.abs(attn - ref_attn)))
    assert jnp.allclose(out, ref_out, atol=2e-2, rtol=2e-2), \
        float(jnp.max(jnp.abs(out - ref_out)))

    print("KERNEL_OK")
</pallas_src>

<mosaic_0001>
module attributes {stable_mosaic.version = 11 : i64} {
  func.func @_self_attn_kernel(%arg0: i32, %arg1: i32, %arg2: memref<1x32x128xf32, #tpu.memory_space<vmem>>, %arg3: memref<1x16x128xbf16, #tpu.memory_space<vmem>>, %arg4: memref<1x16x256xbf16, #tpu.memory_space<vmem>>, %arg5: memref<1x32x256xbf16, #tpu.memory_space<vmem>>, %arg6: memref<1x1xf32, #tpu.memory_space<vmem>>, %arg7: memref<1x32x128xf32, #tpu.memory_space<vmem>>, %arg8: memref<1x128x256xf32, #tpu.memory_space<vmem>>) attributes {dimension_semantics = [#tpu.dimension_semantics<parallel>, #tpu.dimension_semantics<parallel>], iteration_bounds = array<i64: 2, 2>, scalar_prefetch = 0 : i64, scratch_operands = 0 : i64, tpu.core_type = #tpu.core_type<tc>, window_params = [{transform_indices = @transform_0, window_bounds = array<i64: 1, 32, 128>}, {transform_indices = @transform_1, window_bounds = array<i64: 1, 16, 128>}, {transform_indices = @transform_2, window_bounds = array<i64: 1, 16, 256>}, {transform_indices = @transform_3, window_bounds = array<i64: 1, 32, 256>}, {pipeline_mode = #tpu.pipeline_mode<synchronous>, transform_indices = @transform_4, window_bounds = array<i64: 1, 1>}, {transform_indices = @transform_5, window_bounds = array<i64: 1, 32, 128>}, {transform_indices = @transform_6, window_bounds = array<i64: 1, 128, 256>}]} {
    %c0 = arith.constant 0 : index
    %c0_0 = arith.constant 0 : index
    %c0_1 = arith.constant 0 : index
    %0 = vector.load %arg2[%c0, %c0_0, %c0_1] : memref<1x32x128xf32, #tpu.memory_space<vmem>>, vector<1x32x128xf32>
    %1 = vector.shape_cast %0 : vector<1x32x128xf32> to vector<32x128xf32>
    %c0_2 = arith.constant 0 : index
    %c0_3 = arith.constant 0 : index
    %c0_4 = arith.constant 0 : index
    %2 = vector.load %arg3[%c0_2, %c0_3, %c0_4] : memref<1x16x128xbf16, #tpu.memory_space<vmem>>, vector<1x16x128xbf16>
    %3 = vector.shape_cast %2 : vector<1x16x128xbf16> to vector<16x128xbf16>
    %c0_5 = arith.constant 0 : index
    %c0_6 = arith.constant 0 : index
    %c0_7 = arith.constant 0 : index
    %4 = vector.load %arg4[%c0_5, %c0_6, %c0_7] : memref<1x16x256xbf16, #tpu.memory_space<vmem>>, vector<1x16x256xbf16>
    %5 = vector.shape_cast %4 : vector<1x16x256xbf16> to vector<16x256xbf16>
    %c0_8 = arith.constant 0 : index
    %c0_9 = arith.constant 0 : index
    %c0_10 = arith.constant 0 : index
    %6 = vector.load %arg5[%c0_8, %c0_9, %c0_10] : memref<1x32x256xbf16, #tpu.memory_space<vmem>>, vector<1x32x256xbf16>
    %7 = vector.shape_cast %6 : vector<1x32x256xbf16> to vector<32x256xbf16>
    %cst = arith.constant dense<0.000000e+00> : vector<128x256xf32>
    %8 = tpu.matmul %3, %5, %cst {dimension_numbers = #tpu.dot_dimension_numbers<[0], [0], [1], [1], [0, 1, 1, 1], [], []>} : vector<16x128xbf16>, vector<16x256xbf16>, vector<128x256xf32> -> vector<128x256xf32>
    %cst_11 = arith.constant dense<0xFF800000> : vector<128xf32>
    %9 = vector.multi_reduction <maximumf>, %8, %cst_11 [1] : vector<128x256xf32> to vector<128xf32>
    %10 = vector.shape_cast %9 : vector<128xf32> to vector<128x1xf32>
    %11 = vector.broadcast %10 : vector<128x1xf32> to vector<128x256xf32>
    %12 = arith.subf %8, %11 : vector<128x256xf32>
    %13 = math.exp %12 : vector<128x256xf32>
    %cst_12 = arith.constant dense<0.000000e+00> : vector<128xf32>
    %14 = vector.multi_reduction <add>, %13, %cst_12 [1] : vector<128x256xf32> to vector<128xf32>
    %15 = vector.shape_cast %14 : vector<128xf32> to vector<128x1xf32>
    %cst_13 = arith.constant 1.000000e+00 : f32
    %16 = vector.broadcast %cst_13 : f32 to vector<128x1xf32>
    %17 = arith.divf %16, %15 : vector<128x1xf32>
    %18 = vector.broadcast %17 : vector<128x1xf32> to vector<128x256xf32>
    %19 = arith.mulf %13, %18 : vector<128x256xf32>
    %c0_14 = arith.constant 0 : index
    %c0_15 = arith.constant 0 : index
    %c0_16 = arith.constant 0 : index
    %20 = vector.load %arg8[%c0_14, %c0_15, %c0_16] : memref<1x128x256xf32, #tpu.memory_space<vmem>>, vector<1x128x256xf32>
    %21 = vector.shape_cast %20 : vector<1x128x256xf32> to vector<128x256xf32>
    %22 = vector.shape_cast %19 : vector<128x256xf32> to vector<1x128x256xf32>
    tpu.vector_store %arg8[%c0_14, %c0_15, %c0_16], %22 {strides = array<i32>} : memref<1x128x256xf32, #tpu.memory_space<vmem>>, vector<1x128x256xf32>,
    %23 = arith.truncf %19 : vector<128x256xf32> to vector<128x256xbf16>
    %cst_17 = arith.constant dense<0.000000e+00> : vector<32x128xf32>
    %24 = tpu.matmul %7, %23, %cst_17 {dimension_numbers = #tpu.dot_dimension_numbers<[1], [1], [0], [0], [0, 0, 1, 0], [], []>} : vector<32x256xbf16>, vector<128x256xbf16>, vector<32x128xf32> -> vector<32x128xf32>
    %c0_18 = arith.constant 0 : index
    %c0_19 = arith.constant 0 : index
    %25 = vector.load %arg6[%c0_18, %c0_19] : memref<1x1xf32, #tpu.memory_space<vmem>>, vector<1x1xf32>
    %26 = vector.extract %25[0, 0] : f32 from vector<1x1xf32>
    %27 = vector.broadcast %26 : f32 to vector<32x128xf32>
    %28 = arith.mulf %27, %24 : vector<32x128xf32>
    %29 = arith.addf %28, %1 : vector<32x128xf32>
    %c0_20 = arith.constant 0 : index
    %c0_21 = arith.constant 0 : index
    %c0_22 = arith.constant 0 : index
    %30 = vector.load %arg7[%c0_20, %c0_21, %c0_22] : memref<1x32x128xf32, #tpu.memory_space<vmem>>, vector<1x32x128xf32>
    %31 = vector.shape_cast %30 : vector<1x32x128xf32> to vector<32x128xf32>
    %32 = vector.shape_cast %29 : vector<32x128xf32> to vector<1x32x128xf32>
    tpu.vector_store %arg7[%c0_20, %c0_21, %c0_22], %32 {strides = array<i32>} : memref<1x32x128xf32, #tpu.memory_space<vmem>>, vector<1x32x128xf32>,
    return
  }
  func.func @transform_0(%arg0: i32, %arg1: i32) -> (i32, i32, i32) {
    %c0_i32 = arith.constant 0 : i32
    %c0_i32_0 = arith.constant 0 : i32
    return %arg0, %c0_i32, %arg1 : i32, i32, i32
  }
  func.func @transform_1(%arg0: i32, %arg1: i32) -> (i32, i32, i32) {
    %c0_i32 = arith.constant 0 : i32
    %c0_i32_0 = arith.constant 0 : i32
    return %arg0, %c0_i32, %arg1 : i32, i32, i32
  }
  func.func @transform_2(%arg0: i32, %arg1: i32) -> (i32, i32, i32) {
    %c0_i32 = arith.constant 0 : i32
    %c0_i32_0 = arith.constant 0 : i32
    %c0_i32_1 = arith.constant 0 : i32
    return %arg0, %c0_i32, %c0_i32_0 : i32, i32, i32
  }
  func.func @transform_3(%arg0: i32, %arg1: i32) -> (i32, i32, i32) {
    %c0_i32 = arith.constant 0 : i32
    %c0_i32_0 = arith.constant 0 : i32
    %c0_i32_1 = arith.constant 0 : i32
    return %arg0, %c0_i32, %c0_i32_0 : i32, i32, i32
  }
  func.func @transform_4(%arg0: i32, %arg1: i32) -> (i32, i32) {
    %c0_i32 = arith.constant 0 : i32
    %c0_i32_0 = arith.constant 0 : i32
    %c0_i32_1 = arith.constant 0 : i32
    return %c0_i32, %c0_i32_0 : i32, i32
  }
  func.func @transform_5(%arg0: i32, %arg1: i32) -> (i32, i32, i32) {
    %c0_i32 = arith.constant 0 : i32
    %c0_i32_0 = arith.constant 0 : i32
    return %arg0, %c0_i32, %arg1 : i32, i32, i32
  }
  func.func @transform_6(%arg0: i32, %arg1: i32) -> (i32, i32, i32) {
    %c0_i32 = arith.constant 0 : i32
    %c0_i32_0 = arith.constant 0 : i32
    return %arg0, %arg1, %c0_i32 : i32, i32, i32
  }
}

</mosaic_0001>

<bundles_post_ra>
// kernel: self_attn_forward.1
= control target key start
LH: loop header
LB: loop body
LE: loop exit
PB: predicated region body
PF: predicated region fallthrough
CT: control target
= control target key end

     0   :  { %s2627_s0 = inlined_call_operand.hbm [shape: f32[2,32,256], index: 0, kind: input, shape index: {}]   ;;  %s2628_s1 = inlined_call_operand.hbm [shape: bf16[2,16,256], index: 1, kind: input, shape index: {}]   ;;  %s2629_s2 = inlined_call_operand.hbm [shape: bf16[2,16,256], index: 2, kind: input, shape index: {}]   ;;  %s2630_s3 = inlined_call_operand.hbm [shape: bf16[2,32,256], index: 3, kind: input, shape index: {}]   ;;  %s2631_s4 = inlined_call_operand.<no memory space> [shape: f32[1,1], index: 4, kind: input, shape index: {}]   ;;  %s2632_s5 = inlined_call_operand.hbm [shape: f32[2,32,256], index: 5, kind: output, shape index: {0}]   ;;  %s2633_s6 = inlined_call_operand.hbm [shape: f32[2,256,256], index: 6, kind: output, shape index: {1}]  }
   0x1   :  { %2651 = sst [smem:[#allocation29_spill]] %s2628_s1  ;;  %v12_v0 = vstv %s2631_s4 }
   0x2   :  { %2652 = sst [smem:[#allocation30_spill]] %s2632_s5  ;;  %13 = vst [vmem:[#allocation2] sm:$0x1] %v12_v0 }
   0x3   :  { %2653 = sst [smem:[#allocation31_spill]] %s2633_s6 }
   0x4   :  { %14 = vsyncpa [#allocation4], 0 }
   0x5   :  { %16 = vsyncpa [#allocation4 + $0x1], 0 }
   0x6   :  { %17 = vsyncpa [#allocation7], 0 }
   0x7   :  { %19 = vsyncpa [#allocation7 + $0x1], 0 }
   0x8   :  { %20 = vsyncpa [#allocation10], 0 }
   0x9   :  { %22 = vsyncpa [#allocation10 + $0x1], 0 }
   0xa   :  { %23 = vsyncpa [#allocation5], 0 }
   0xb   :  { %25 = vsyncpa [#allocation5 + $0x1], 0 }
   0xc   :  { %26 = vsyncpa [#allocation13], 0 }
   0xd   :  { %28 = vsyncpa [#allocation13 + $0x1], 0  ;;  %s1873_s23 = smov 0   ;;  %s1875_s24 = smov 0  }
   0xe   :  { %s1877_s25 = smov 0   ;;  %s1879_s26 = smov 0  }
   0xf   :  { %s1881_s4 = smov 0   ;;  %s1883_s27 = smov 0  }
  0x10   :  { %s1885_s28 = smov 0   ;;  %s1887_s29 = smov 0  }
  0x11   :  { %s1889_s30 = smov 0   ;;  %s1891_s7 = smov 0  }
  0x12   :  { %s1893_s8 = smov 0  }
  0x13 LB: > { %2654 = sst [smem:[#allocation20_spill]] %s1789_s26  ;;  %s1929_s9 = sadd.s32 4294967295, %s1817_s8   ;;  %s1817_s8 = sphi %s1893_s8, %s34_s8   ;;  %s1813_s7 = sphi %s1891_s7, %s2700_s7   ;;  %s1809_s30 = sphi %s1889_s30, %s2699_s30   ;;  %s1805_s29 = sphi %s1887_s29, %s2698_s29   ;;  %s1801_s28 = sphi %s1885_s28, %s2697_s28   ;;  %s1797_s27 = sphi %s1883_s27, %s2696_s27   ;;  %s1793_s4 = sphi %s1881_s4, %s2695_s4   ;;  %s1789_s26 = sphi %s1879_s26, %s2694_s26   ;;  %s1785_s25 = sphi %s1877_s25, %s2693_s25   ;;  %s1781_s24 = sphi %s1875_s24, %s2692_s24   ;;  %s1777_s23 = sphi %s1873_s23, %s2691_s23  }
  0x14   : > { %2655 = sst [smem:[#allocation21_spill]] %s1797_s27  ;;  %s1225_s10 = sadd.s32 4294967294, %s1817_s8  }
  0x15   : > { %2656 = sst [smem:[#allocation22_spill]] %s1801_s28  ;;  %s43_s11 = sadd.s32 1, %s1809_s30 }
  0x16   : > { %2657 = sst [smem:[#allocation23_spill]] %s1805_s29  ;;  %s46_s12 = sadd.s32 1, %s1813_s7 }
  0x17   : > { %p44_p0 = scmp.ge.s32.totalorder %s43_s11, 2  ;;  %s55_s13 = sadd.s32 1, %s1797_s27 }
  0x18   : > { %p62_p1 = scmp.ne.s32.totalorder %s1797_s27, %s1793_s4  ;;  %p2643_p2 = scmp.eq.s32.totalorder %s1817_s8, 0 }
  0x19   : > { %s2702_s11 = smov (%p44_p0, %s43_s11), 0  ;;  %s2704_s12 = smov (!%p44_p0, %s46_s12), %s1813_s7 }
  0x1a   : > { %2658 = sst [smem:[#allocation24_spill]] %s2702_s11  ;;  %s51_s14 = ssub.s32 %s1809_s30, %s2702_s11 }
  0x1b   : > { %p1945_p3 = por %p2643_p2, %p62_p1  ;;  %p48_p4 = scmp.ge.s32.totalorder %s2704_s12, 2 }
  0x1c   : > { %p68_p5 = scmp.ne.s32.totalorder %s1793_s4, %s1789_s26  ;;  %p2642_p6 = scmp.eq.s32.totalorder %s1929_s9, 0 }
  0x1d   : > { %p195_p7 = scmp.eq.s32.totalorder %s1929_s9, 3  ;;  %s2706_s12 = smov (%p48_p4, %s2704_s12), 0 }
  0x1e   : > { %2660 = sst [smem:[#allocation25_spill]] %s2706_s12  ;;  %p1957_p8 = por %p2642_p6, %p68_p5 }
  0x1f   : > { %p1961_p9 = por %p195_p7, %p62_p1  ;;  %s1967_s18 = ssub.s32 %s1813_s7, %s2706_s12 }
  0x20   : > { %s2661_s16 = scalar_select %p1957_p8, 1, 0 }
  0x21   : > { %s2662_s17 = scalar_select %p1961_p9, 1, 0 }
  0x22   : > { %p201_p10 = scmp.eq.s32.totalorder %s1225_s10, 3  ;;  %s52_s19 = sor.u32 %s51_s14, %s1967_s18 }
  0x23   : > { %2663 = sst [smem:[#allocation26_spill]] %s2662_s17  ;;  %p53_p12 = scmp.eq.s32.totalorder %s52_s19, 0 }
  0x24   : > { %p1971_p13 = por %p201_p10, %p68_p5  ;;  %p2641_p0 = scmp.lt.s32.totalorder %s1817_s8, 4 }
  0x25   : > { %s1977_s21 = scalar_select %p53_p12, %s1797_s27, %s55_s13  }
  0x26   : > { %s2664_s20 = scalar_select %p1971_p13, 1, 0 }
  0x27   : > { %2666 = sst [smem:[#allocation28_spill]] %s1977_s21  ;;  %s1980_s22 = sand.u32 1, %s1797_s27  }
  0x28   : > { %2665 = sst [smem:[#allocation27_spill]] %s2664_s20  ;;  %p1986_p1 = pnand %p2641_p0, %p1945_p3 }
  0x29   : > { %s274_s10 = sand.u32 1, %s1817_s8   ;;  %s1231_s14 = sshll.u32 %s1980_s22, 3 }
  0x2a   : > { %s1232_s19 = sshll.u32 %s1813_s7, 2  ;;  %s278_s20 = scalar_lea.vmem [#allocation6], %s1231_s14 }
  0x2b   : > { %s283_s11 = sadd.s32 %s1809_s30, %s1232_s19  ;;  %s286_s5 = sshll.u32 %s278_s20, 4  ;;  %s1999_s5 = int_to_ptr.vmem [resolvable:$true] %s286_s5 }
  0x2c   : > { %s1233_s26 = sshll.u32 %s283_s11, 6  ;;  %s2668_s1 = sld [smem:[#allocation29_spill]] }
  0x2d   : > { %s2001_s15 = scalar_lea.sflag [#allocation7], %s274_s10  ;;  %p1533_p4 = pneg %p1986_p1 }
  0x32   : > { %s1997_s27 = scalar_lea.hbm %s2668_s1, %s1233_s26  ;;  %s1536_s26 = scalar_lea.hbm %s2668_s1, 512 }
  0x33   : > { %s1531_s6 = scalar_lea.hbm %s1997_s27, 128  ;;  %p1537_p10 = scmp.lt.u32.totalorder %s1997_s27, %s2668_s1 }
  0x34   : > { %p1532_p3 = scmp.ne.s32.totalorder %s1997_s27, %s1531_s6  ;;  %p1538_p12 = scmp.lt.u32.totalorder %s1536_s26, %s1531_s6 }
  0x35   : > { %p1540_p6 = scmp.lt.u32.totalorder %s1531_s6, %s1997_s27 }
  0x36   : > { %p1534_p5 = pnand %p1533_p4, %p1532_p3  ;;  %p1539_p0 = por %p1538_p12, %p1537_p10 }
  0x38   : > { %p1535_p7 = pneg %p1534_p5  ;;  %p1541_p2 = por %p1540_p6, %p1539_p0 }
  0x3a   : > { %p1542_p11 = pnand %p1541_p2, %p1535_p7 }
  0x3c   : > { %1545 = shalt.err (!%p1542_p11)
}
  0x3d   : > { %s1546_s10 = scalar_lea.vmem %s1999_s5, 128  ;;  %s1819_s19 = smov [#allocation6]  }
  0x3e   : > { %p1547_p3 = scmp.ne.s32.totalorder %s1999_s5, %s1546_s10  ;;  %s1551_s13 = sshll.u32 %s1819_s19, 4  ;;  %s1552_s13 = int_to_ptr.vmem [resolvable:$false] %s1551_s13 }
  0x3f   : > { %s1553_s11 = scalar_lea.vmem %s1552_s13, 256  ;;  %p1554_p9 = scmp.lt.s32.totalorder %s1999_s5, %s1552_s13 }
  0x40   : > { %p1549_p5 = pnand %p1547_p3, %p1533_p4  ;;  %p1555_p10 = scmp.lt.s32.totalorder %s1553_s11, %s1546_s10 }
  0x42   : > { %p1550_p13 = pneg %p1549_p5  ;;  %p1556_p12 = por %p1555_p10, %p1554_p9 }
  0x44   : > { %p1557_p6 = pnand %p1556_p12, %p1550_p13 }
  0x46   : > { %1560 = shalt.err (!%p1557_p6)
}
  0x47   : > { %s1820_s6 = smov 128   ;;  %s1821_s20 = smov 64  }
  0x48   : > { %s1822_s26 = smov 4   ;;  %p1240_p2 = scmp.ge.s32.totalorder %s1817_s8, 1 }
  0x49   : > { %1311 = dma.hbm_to_vmem [thread:$0]  (!%p1986_p1), %s1997_s27, 128, %s1999_s5, %s2001_s15, %s1820_s6, %s1821_s20, %s1822_s26  }
  0x4a   : > { %p336_p9 = scmp.lt.s32.totalorder %s1817_s8, 5  ;;  %s1228_s14 = sshll.u32 %s1980_s22, 5 }
  0x4b   : > { %s1229_s10 = sshll.u32 %s1813_s7, 3  ;;  %s256_s11 = scalar_lea.vmem [#allocation3], %s1228_s14 }
  0x4c   : > { %p2032_p11 = pnand %p1240_p2, %p336_p9  ;;  %s261_s19 = sadd.s32 %s1809_s30, %s1229_s10 }
  0x4d   : > { %s1230_s13 = sshll.u32 %s261_s19, 7  ;;  %s264_s1 = sshll.u32 %s256_s11, 4  ;;  %s2044_s1 = int_to_ptr.vmem [resolvable:$true] %s264_s1 }
  0x4e   : > { %s2042_s28 = scalar_lea.hbm %s2627_s0, %s1230_s13  ;;  %s253_s5 = scalar_lea.sflag [#allocation4], %s1980_s22 }
  0x4f   : > { %s1561_s27 = scalar_lea.hbm %s2042_s28, 512  ;;  %s1566_s14 = scalar_lea.hbm %s2627_s0, 2048 }
  0x50   : > { %p1562_p13 = scmp.ne.s32.totalorder %s2042_s28, %s1561_s27  ;;  %p1567_p3 = scmp.lt.u32.totalorder %s2042_s28, %s2627_s0 }
  0x51   : > { %p1568_p5 = scmp.lt.u32.totalorder %s1566_s14, %s1561_s27  ;;  %p1570_p12 = scmp.lt.u32.totalorder %s1561_s27, %s2042_s28 }
  0x52   : > { %p1564_p0 = pnand %p1562_p13, %p1533_p4 }
  0x53   : > { %p1569_p10 = por %p1568_p5, %p1567_p3 }
  0x54   : > { %p1565_p7 = pneg %p1564_p0 }
  0x55   : > { %p1571_p6 = por %p1570_p12, %p1569_p10 }
  0x57   : > { %p1572_p2 = pnand %p1571_p6, %p1565_p7 }
  0x59   : > { %1575 = shalt.err (!%p1572_p2)
}
  0x5a   : > { %s1576_s10 = scalar_lea.vmem %s2044_s1, 512  ;;  %s1823_s19 = smov [#allocation3]  }
  0x5b   : > { %p1577_p9 = scmp.ne.s32.totalorder %s2044_s1, %s1576_s10  ;;  %s1581_s13 = sshll.u32 %s1823_s19, 4  ;;  %s1582_s13 = int_to_ptr.vmem [resolvable:$false] %s1581_s13 }
  0x5c   : > { %s1583_s11 = scalar_lea.vmem %s1582_s13, 1024  ;;  %p1584_p8 = scmp.lt.s32.totalorder %s2044_s1, %s1582_s13 }
  0x5d   : > { %p1579_p13 = pnand %p1577_p9, %p1533_p4  ;;  %p1585_p3 = scmp.lt.s32.totalorder %s1583_s11, %s1576_s10 }
  0x5f   : > { %p1580_p0 = pneg %p1579_p13  ;;  %p1586_p5 = por %p1585_p3, %p1584_p8 }
  0x61   : > { %p1587_p10 = pnand %p1586_p5, %p1580_p0 }
  0x63   : > { %1590 = shalt.err (!%p1587_p10)
}
  0x64   : > { %s1824_s27 = smov 256   ;;  %s1825_s20 = smov 8  }
  0x65   : > { %1308 = dma.hbm_to_vmem [thread:$0]  (!%p1986_p1), %s2042_s28, 512, %s2044_s1, %s253_s5, %s1824_s27, %s1820_s6, %s1825_s20  }
  0x66   : > { %s109_s26 = sadd.s32 1, %s1785_s25  ;;  %p116_p8 = scmp.ne.s32.totalorder %s1785_s25, %s1781_s24 }
  0x67   : > { %p2670_p4 = scmp.eq.s32.totalorder %s1967_s18, 0  ;;  %p2671_p7 = scmp.eq.s32.totalorder %s1817_s8, 0 }
  0x68   : > { %p122_p6 = scmp.ne.s32.totalorder %s1781_s24, %s1777_s23  ;;  %s2087_s29 = sand.u32 1, %s1785_s25  }
  0x69   : > { %s2080_s14 = scalar_select %p2670_p4, %s1785_s25, %s109_s26  }
  0x6a   : > { %p118_p12 = por %p116_p8, %p2671_p7  ;;  %s1272_s17 = sshll.u32 %s1813_s7, 8 }
  0x6b   : > { %p2672_p2 = scmp.eq.s32.totalorder %s1929_s9, 0  ;;  %s1234_s22 = sshll.u32 %s2087_s29, 4 }
  0x6c   : > { %s2100_s18 = scalar_lea.hbm %s2629_s2, %s1272_s17  ;;  %s300_s23 = scalar_lea.vmem [#allocation8], %s1234_s22 }
  0x6d   : > { %p2092_p9 = por %p122_p6, %p2672_p2  ;;  %s307_s5 = sshll.u32 %s300_s23, 4  ;;  %s2108_s5 = int_to_ptr.vmem [resolvable:$true] %s307_s5 }
  0x6e   : > { %p2674_p1 = scmp.lt.s32.totalorder %s1817_s8, 4  ;;  %s1237_s19 = sshll.u32 %s2087_s29, 5 }
  0x6f   : > { %s2673_s12 = scalar_select %p2092_p9, 1, 0 }
  0x70   : > { %p2104_p13 = pnand %p2674_p1, %p118_p12  ;;  %s1591_s13 = scalar_lea.hbm %s2100_s18, 256 }
  0x71   : > { %p1592_p0 = scmp.ne.s32.totalorder %s2100_s18, %s1591_s13  ;;  %s1596_s26 = scalar_lea.hbm %s2629_s2, 512 }
  0x72   : > { %p1593_p3 = pneg %p2104_p13  ;;  %p1597_p8 = scmp.lt.u32.totalorder %s2100_s18, %s2629_s2 }
  0x73   : > { %p1598_p4 = scmp.lt.u32.totalorder %s1596_s26, %s1591_s13  ;;  %p1600_p12 = scmp.lt.u32.totalorder %s1591_s13, %s2100_s18 }
  0x74   : > { %p1594_p5 = pnand %p1593_p3, %p1592_p0 }
  0x75   : > { %p1599_p7 = por %p1598_p4, %p1597_p8 }
  0x76   : > { %p1595_p10 = pneg %p1594_p5 }
  0x77   : > { %p1601_p6 = por %p1600_p12, %p1599_p7 }
  0x79   : > { %p1602_p2 = pnand %p1601_p6, %p1595_p10 }
  0x7b   : > { %1605 = shalt.err (!%p1602_p2)
}
  0x7c   : > { %s1606_s1 = scalar_lea.vmem %s2108_s5, 256  ;;  %s1826_s28 = smov [#allocation8]  }
  0x7d   : > { %p1607_p1 = scmp.ne.s32.totalorder %s2108_s5, %s1606_s1  ;;  %s1611_s23 = sshll.u32 %s1826_s28, 4  ;;  %s1612_s23 = int_to_ptr.vmem [resolvable:$false] %s1611_s23 }
  0x7e   : > { %s1613_s11 = scalar_lea.vmem %s1612_s23, 512  ;;  %p1614_p9 = scmp.lt.s32.totalorder %s2108_s5, %s1612_s23 }
  0x7f   : > { %p1609_p0 = pnand %p1607_p1, %p1593_p3  ;;  %p1615_p8 = scmp.lt.s32.totalorder %s1613_s11, %s1606_s1 }
  0x81   : > { %p1610_p5 = pneg %p1609_p0  ;;  %p1616_p4 = por %p1615_p8, %p1614_p9 }
  0x83   : > { %p1617_p7 = pnand %p1616_p4, %p1610_p5 }
  0x85   : > { %1620 = shalt.err (!%p1617_p7)
}
  0x86   : > { %1314 = dma.hbm_to_vmem [thread:$0]  (!%p2104_p13), %s2100_s18, 256, %s2108_s5, %s2001_s15, %s1820_s6, %s1820_s6, %s1825_s20  }
  0x87   : > { %s1273_s13 = sshll.u32 %s1813_s7, 9  ;;  %s321_s22 = scalar_lea.vmem [#allocation9], %s1237_s19 }
  0x88   : > { %s2144_s17 = scalar_lea.hbm %s2630_s3, %s1273_s13  ;;  %s328_s1 = sshll.u32 %s321_s22, 4  ;;  %s2148_s1 = int_to_ptr.vmem [resolvable:$true] %s328_s1 }
  0x89   : > { %s318_s28 = scalar_lea.sflag [#allocation10], %s2087_s29  ;;  %s1621_s23 = scalar_lea.hbm %s2144_s17, 512 }
  0x8a   : > { %p1622_p9 = scmp.ne.s32.totalorder %s2144_s17, %s1621_s23  ;;  %s1626_s5 = scalar_lea.hbm %s2630_s3, 1024 }
  0x8b   : > { %p1627_p6 = scmp.lt.u32.totalorder %s2144_s17, %s2630_s3  ;;  %p1628_p2 = scmp.lt.u32.totalorder %s1626_s5, %s1621_s23 }
  0x8c   : > { %p1624_p10 = pnand %p1622_p9, %p1593_p3  ;;  %p1630_p0 = scmp.lt.u32.totalorder %s1621_s23, %s2144_s17 }
  0x8d   : > { %p1629_p1 = por %p1628_p2, %p1627_p6 }
  0x8e   : > { %p1625_p12 = pneg %p1624_p10 }
  0x8f   : > { %p1631_p5 = por %p1630_p0, %p1629_p1 }
  0x91   : > { %p1632_p8 = pnand %p1631_p5, %p1625_p12 }
  0x93   : > { %1635 = shalt.err (!%p1632_p8)
}
  0x94   : > { %s1636_s19 = scalar_lea.vmem %s2148_s1, 512  ;;  %s1827_s27 = smov [#allocation9]  }
  0x95   : > { %p1637_p4 = scmp.ne.s32.totalorder %s2148_s1, %s1636_s19  ;;  %s1641_s26 = sshll.u32 %s1827_s27, 4  ;;  %s1642_s26 = int_to_ptr.vmem [resolvable:$false] %s1641_s26 }
  0x96   : > { %s1643_s22 = scalar_lea.vmem %s1642_s26, 1024  ;;  %p1644_p10 = scmp.lt.s32.totalorder %s2148_s1, %s1642_s26 }
  0x97   : > { %p1639_p7 = pnand %p1637_p4, %p1593_p3  ;;  %p1645_p6 = scmp.lt.s32.totalorder %s1643_s22, %s1636_s19 }
  0x99   : > { %p1640_p9 = pneg %p1639_p7  ;;  %p1646_p2 = por %p1645_p6, %p1644_p10 }
  0x9b   : > { %p1647_p1 = pnand %p1646_p2, %p1640_p9 }
  0x9d   : > { %1650 = shalt.err (!%p1647_p1)
}
  0x9e   : > { %1317 = dma.hbm_to_vmem [thread:$0]  (!%p2104_p13), %s2144_s17, 512, %s2148_s1, %s318_s28, %s1820_s6, %s1820_s6, %s1825_s20  }
  0x9f   : > { %340 = sbr.rel (%p2032_p11) target bundleno = 1114 (0x45a), region = 40  ;;  %s2182_s23 = sand.u32 (!%p2032_p11), 1, %s1793_s4  }
  0xa0   : > { %s1241_s15 = sshll.u32 (!%p2032_p11), %s2182_s23, 5  ;;  %s343_s10 = scalar_lea.sflag (!%p2032_p11), [#allocation4], %s2182_s23 }
  0xa1   : > { %s2188_s18 = scalar_lea.vmem (!%p2032_p11), [#allocation3], %s1241_s15  ;;  %p2676_p3 = scmp.ne.s32.totalorder (!%p2032_p11), %s2661_s16, 0 }
  0xa6   : > { %1752 = dma.done.wait (%p2676_p3), %s343_s10, 512  }
  0xa7   : > { %1754 = vsyncadd (%p2676_p3), %s343_s10, 4294966784  ;;  %s351_s6 = sand.u32 1, %s1929_s9   ;;  %s1242_s21 = sshll.u32 %s2182_s23, 3 }
  0xa8   : > { %s352_s20 = scalar_lea.sflag [#allocation7], %s351_s6  ;;  %s355_s29 = scalar_lea.vmem [#allocation6], %s1242_s21 }
  0xa9   : > { %1756 = dma.done.wait (%p2676_p3), %s352_s20, 128  }
  0xaa   : > { %1758 = vsyncadd (%p2676_p3), %s352_s20, 4294967168  ;;  %s362_s17 = sand.u32 1, %s1781_s24   ;;  %p2677_p11 = scmp.ne.s32.totalorder %s2673_s12, 0 }
  0xab   : > { %s1243_s1 = sshll.u32 %s362_s17, 4 }
  0xac   : > { %s364_s28 = scalar_lea.vmem [#allocation8], %s1243_s1 }
  0xad   : > { %1760 = dma.done.wait (%p2677_p11), %s352_s20, 256  }
  0xae   : > { %1762 = vsyncadd (%p2677_p11), %s352_s20, 4294967040  ;;  %s1244_s9 = sshll.u32 %s362_s17, 5  ;;  %s370_s5 = scalar_lea.sflag [#allocation10], %s362_s17 }
  0xaf   : > { %s2205_s11 = scalar_lea.vmem [#allocation9], %s1244_s9 }
  0xb0   : > { %1764 = dma.done.wait (%p2677_p11), %s370_s5, 512  }
  0xb1   : > { %1766 = vsyncadd (%p2677_p11), %s370_s5, 4294966784  ;;  %v1828_v1 = vmov 0   ;;  %v1425_v2 = vld [vmem:[%s355_s29] sm:$0xff]   ;;  %vm468_vm0 = vcmask 130048   ;;  %s1246_s16 = sshll.u32 %s2182_s23, 8  ;;  %s2678_s13 = sld [smem:[#allocation22_spill]] }
  0xb2   : > { %525 = vmatprep.mubr.bf16.mxu0 %v1828_v1  ;;  %v1426_v3 = vld [vmem:[%s364_s28 + $0x4] ss:$8 sps:$4 sm:$0xff]   ;;  %442 = vxpose.xlu0.c.b16.start.end [1/1] (short) %v1425_v2, 128  ;;  %v1428_v4 = vld [vmem:[%s364_s28] ss:$8 sps:$4 sm:$0xff]   ;;  %s2449_s12 = scalar_lea.vmem [#allocation12], %s1246_s16  ;;  %s2679_s19 = sld [smem:[#allocation23_spill]] }
  0xb3   : > { %493 = vmatprep.subr.bf16.mxu0 %v1426_v3  ;;  %s2680_s27 = sld [smem:[#allocation26_spill]]  ;;  %s1033_s10 = sshll.u32 %s2449_s12, 4  ;;  %s2517_s10 = int_to_ptr.vmem [resolvable:$true] %s1033_s10 }
  0xb4   : > { %494 = vmatpush1.bf16.msra.mxu0 %v1428_v4  ;;  %s2681_s17 = sld [smem:[#allocation31_spill]]  ;;  %s1000_s28 = scalar_lea.sflag [#allocation13], %s2182_s23 }
  0xb5   : > { %s1651_s9 = scalar_lea.vmem %s2517_s10, 4096  ;;  %s1829_s5 = smov [#allocation12]  }
  0xb6   : > { %p1652_p13 = scmp.ne.s32.totalorder %s2517_s10, %s1651_s9 }
  0xb7   : > { %s1274_s26 = sshll.u32 %s2678_s13, 5 }
  0xb8   : > { %s1268_s22 = sshll.u32 %s2679_s19, 6 }
  0xb9   : > { %s1030_s6 = sadd.s32 %s1274_s26, %s1268_s22  ;;  %p2682_p12 = scmp.ne.s32.totalorder %s2680_s27, 0 }
  0xba   : > { %s1269_s21 = sshll.u32 %s1030_s6, 7 }
  0xbb   : > { %s2522_s1 = scalar_lea.hbm %s2681_s17, %s1269_s21  ;;  %p1653_p0 = pnand %p1652_p13, %p2682_p12 }
  0xbd   : > { %p1654_p5 = pneg %p1653_p0 }
 0x118   : > { %v450_v5 = vpop.trf.xlu0 }
 0x119   : > { %1250 = vmatmul.mubr.msk.bf16.vlgmr.msra.gmra.mrb[0].mxu0 %vm468_vm0, %v450_v5 }
 0x11a   : > { %535 = vmatprep.mubr.bf16.mxu0 %v1828_v1 }
 0x11c   : > { %v451_v6 = vpop.trf.xlu0 }
 0x120   : > { %v452_v7 = vpop.trf.xlu0 }
 0x121   : > { %1251 = vmatmul.mubr.msk.bf16.gmra.mrb[4].mxu0 %vm468_vm0, %v451_v6 }
 0x122   : > { %545 = vmatprep.mubr.bf16.mxu0 %v1828_v1 }
 0x124   : > { %v453_v8 = vpop.trf.xlu0 }
 0x128   : > { %v454_v9 = vpop.trf.xlu0 }
 0x129   : > { %1252 = vmatmul.mubr.msk.bf16.gmra.mrb[8].mxu0 %vm468_vm0, %v452_v7 }
 0x12a   : > { %555 = vmatprep.mubr.bf16.mxu0 %v1828_v1 }
 0x12c   : > { %v455_v10 = vpop.trf.xlu0 }
 0x130   : > { %v456_v11 = vpop.trf.xlu0 }
 0x131   : > { %1253 = vmatmul.mubr.msk.bf16.gmra.mrb[12].mxu0 %vm468_vm0, %v453_v8 }
 0x132   : > { %565 = vmatprep.mubr.bf16.mxu0 %v1828_v1 }
 0x134   : > { %v457_v12 = vpop.trf.xlu0 }
 0x139   : > { %1254 = vmatmul.mubr.msk.bf16.gmra.mrb[16].mxu0 %vm468_vm0, %v454_v9 }
 0x13a   : > { %575 = vmatprep.mubr.bf16.mxu0 %v1828_v1 }
 0x141   : > { %1255 = vmatmul.mubr.msk.bf16.gmra.mrb[20].mxu0 %vm468_vm0, %v455_v10 }
 0x142   : > { %585 = vmatprep.mubr.bf16.mxu0 %v1828_v1 }
 0x149   : > { %1256 = vmatmul.mubr.msk.bf16.gmra.mrb[24].mxu0 %vm468_vm0, %v456_v11 }
 0x14a   : > { %595 = vmatprep.mubr.bf16.mxu0 %v1828_v1 }
 0x151   : > { %1257 = vmatmul.mubr.msk.bf16.gmra.mrb[28].mxu0 %vm468_vm0, %v457_v12 }
 0x1ec   : > { %v2219_v13 = vpop.f32.mrb[0].mxu0 }
 0x1ed   : > { %v2221_v14 = vpop.f32.mrb[1].mxu0 }
 0x1ee   : > { %v2223_v15 = vpop.f32.mrb[2].mxu0  ;;  %v606_v16 = vmax.f32 %v2219_v13, %v2221_v14 }
 0x1ef   : > { %v2227_v17 = vpop.f32.mrb[3].mxu0 }
 0x1f0   : > { %607 = vmax.xlane.f32.xlu0 %v606_v16  ;;  %v609_v18 = vmax.f32 %v2223_v15, %v2227_v17 }
 0x1f2   : > { %610 = vmax.xlane.f32.xlu1 %v609_v18 }
 0x1f4   : > { %v2231_v19 = vpop.f32.mrb[4].mxu0 }
 0x1f5   : > { %v2233_v20 = vpop.f32.mrb[5].mxu0 }
 0x1f6   : > { %v2235_v21 = vpop.f32.mrb[6].mxu0  ;;  %v612_v22 = vmax.f32 %v2231_v19, %v2233_v20 }
 0x1f7   : > { %v2239_v23 = vpop.f32.mrb[7].mxu0 }
 0x1f8   : > { %613 = vmax.xlane.f32.xlu1 %v612_v22  ;;  %v615_v24 = vmax.f32 %v2235_v21, %v2239_v23 }
 0x1fc   : > { %616 = vmax.xlane.f32.xlu1 %v615_v24  ;;  %v2243_v25 = vpop.f32.mrb[8].mxu0 }
 0x1fd   : > { %v2245_v26 = vpop.f32.mrb[9].mxu0 }
 0x1fe   : > { %v2247_v27 = vpop.f32.mrb[10].mxu0  ;;  %v618_v28 = vmax.f32 %v2243_v25, %v2245_v26 }
 0x1ff   : > { %v2251_v29 = vpop.f32.mrb[11].mxu0 }
 0x200   : > { %619 = vmax.xlane.f32.xlu1 %v618_v28  ;;  %v621_v30 = vmax.f32 %v2247_v27, %v2251_v29 }
 0x204   : > { %622 = vmax.xlane.f32.xlu1 %v621_v30  ;;  %v2255_v31 = vpop.f32.mrb[12].mxu0 }
 0x205   : > { %v2257_v32 = vpop.f32.mrb[13].mxu0 }
 0x206   : > { %v2259_v33 = vpop.f32.mrb[14].mxu0  ;;  %v624_v34 = vmax.f32 %v2255_v31, %v2257_v32 }
 0x207   : > { %v2263_v35 = vpop.f32.mrb[15].mxu0 }
 0x208   : > { %625 = vmax.xlane.f32.xlu1 %v624_v34  ;;  %v627_v36 = vmax.f32 %v2259_v33, %v2263_v35 }
 0x20c   : > { %628 = vmax.xlane.f32.xlu1 %v627_v36  ;;  %v2267_v37 = vpop.f32.mrb[16].mxu0 }
 0x20d   : > { %v2269_v38 = vpop.f32.mrb[17].mxu0 }
 0x20e   : > { %v2271_v39 = vpop.f32.mrb[18].mxu0  ;;  %v630_v40 = vmax.f32 %v2267_v37, %v2269_v38 }
 0x20f   : > { %v2275_v41 = vpop.f32.mrb[19].mxu0 }
 0x210   : > { %631 = vmax.xlane.f32.xlu1 %v630_v40  ;;  %v633_v42 = vmax.f32 %v2271_v39, %v2275_v41 }
 0x214   : > { %634 = vmax.xlane.f32.xlu1 %v633_v42  ;;  %v2279_v43 = vpop.f32.mrb[20].mxu0 }
 0x215   : > { %v2281_v44 = vpop.f32.mrb[21].mxu0 }
 0x216   : > { %v2283_v45 = vpop.f32.mrb[22].mxu0  ;;  %v636_v46 = vmax.f32 %v2279_v43, %v2281_v44 }
 0x217   : > { %v2287_v47 = vpop.f32.mrb[23].mxu0 }
 0x218   : > { %637 = vmax.xlane.f32.xlu1 %v636_v46  ;;  %v639_v48 = vmax.f32 %v2283_v45, %v2287_v47 }
 0x21c   : > { %640 = vmax.xlane.f32.xlu1 %v639_v48  ;;  %v2291_v49 = vpop.f32.mrb[24].mxu0 }
 0x21d   : > { %v2293_v50 = vpop.f32.mrb[25].mxu0 }
 0x21e   : > { %v2295_v51 = vpop.f32.mrb[26].mxu0  ;;  %v642_v52 = vmax.f32 %v2291_v49, %v2293_v50 }
 0x21f   : > { %v2299_v53 = vpop.f32.mrb[27].mxu0 }
 0x220   : > { %643 = vmax.xlane.f32.xlu1 %v642_v52  ;;  %v645_v54 = vmax.f32 %v2295_v51, %v2299_v53 }
 0x222   : > { %646 = vmax.xlane.f32.xlu0 %v645_v54 }
 0x224   : > { %v2303_v55 = vpop.f32.mrb[28].mxu0 }
 0x225   : > { %v2305_v56 = vpop.f32.mrb[29].mxu0 }
 0x226   : > { %v2307_v57 = vpop.f32.mrb[30].mxu0  ;;  %v648_v58 = vmax.f32 %v2303_v55, %v2305_v56 }
 0x227   : > { %v2311_v59 = vpop.f32.mrb[31].mxu0 }
 0x228   : > { %649 = vmax.xlane.f32.xlu1 %v648_v58  ;;  %v651_v60 = vmax.f32 %v2307_v57, %v2311_v59 }
 0x22a   : > { %652 = vmax.xlane.f32.xlu0 %v651_v60 }
 0x27d   : > { %v608_v61 = vpop.xlane.xlu0 %607 }
 0x27e   : > { %v654_v62 = vsub.f32 %v2219_v13, %v608_v61  ;;  %v655_v63 = vsub.f32 %v2221_v14, %v608_v61 }
 0x27f   : > { %v611_v0 = vpop.xlane.xlu1 %610 }
 0x280   : > { %v686_v1 = vmul.f32 1.442695, %v654_v62  ;;  %v688_v2 = vmul.f32 1.442695, %v655_v63  ;;  %v656_v3 = vsub.f32 %v2223_v15, %v611_v0  ;;  %v657_v4 = vsub.f32 %v2227_v17, %v611_v0 }
 0x282   : > { %1435 = vpow2.f32 %v686_v1  ;;  %v690_v5 = vmul.f32 1.442695, %v656_v3  ;;  %v692_v6 = vmul.f32 1.442695, %v657_v4 }
 0x283   : > { %1437 = vpow2.f32 %v688_v2 }
 0x284   : > { %1439 = vpow2.f32 %v690_v5 }
 0x285   : > { %1441 = vpow2.f32 %v692_v6  ;;  %v614_v7 = vpop.xlane.xlu1 %613 }
 0x286   : > { %v658_v8 = vsub.f32 %v2231_v19, %v614_v7  ;;  %v659_v9 = vsub.f32 %v2233_v20, %v614_v7 }
 0x288   : > { %v694_v10 = vmul.f32 1.442695, %v658_v8  ;;  %v696_v11 = vmul.f32 1.442695, %v659_v9 }
 0x289   : > { %v617_v12 = vpop.xlane.xlu1 %616 }
 0x28a   : > { %1443 = vpow2.f32 %v694_v10  ;;  %v660_v13 = vsub.f32 %v2235_v21, %v617_v12  ;;  %v661_v14 = vsub.f32 %v2239_v23, %v617_v12 }
 0x28b   : > { %1445 = vpow2.f32 %v696_v11 }
 0x28c   : > { %v2323_v15 = vpop.eup %1435  ;;  %v698_v16 = vmul.f32 1.442695, %v660_v13  ;;  %v700_v17 = vmul.f32 1.442695, %v661_v14 }
 0x28d   : > { %v2325_v18 = vpop.eup %1437  ;;  %v620_v22 = vpop.xlane.xlu1 %619 }
 0x28e   : > { %v2327_v24 = vpop.eup %1439  ;;  %1447 = vpow2.f32 %v698_v16  ;;  %v662_v19 = vsub.f32 %v2243_v25, %v620_v22  ;;  %v663_v20 = vsub.f32 %v2245_v26, %v620_v22  ;;  %v750_v21 = vadd.f32 %v2325_v18, %v2323_v15 }
 0x28f   : > { %v2333_v28 = vpop.eup %1441  ;;  %1449 = vpow2.f32 %v700_v17 }
 0x290   : > { %v702_v23 = vmul.f32 1.442695, %v662_v19  ;;  %v704_v30 = vmul.f32 1.442695, %v663_v20  ;;  %751 = vadd.xlane.f32.xlu1 %v750_v21  ;;  %v753_v34 = vadd.f32 %v2333_v28, %v2327_v24 }
 0x291   : > { %v623_v36 = vpop.xlane.xlu1 %622 }
 0x292   : > { %1451 = vpow2.f32 %v702_v23  ;;  %v664_v40 = vsub.f32 %v2247_v27, %v623_v36  ;;  %v665_v25 = vsub.f32 %v2251_v29, %v623_v36  ;;  %754 = vadd.xlane.f32.xlu0 %v753_v34 }
 0x293   : > { %1453 = vpow2.f32 %v704_v30 }
 0x294   : > { %v2339_v26 = vpop.eup %1443  ;;  %v706_v42 = vmul.f32 1.442695, %v664_v40  ;;  %v708_v46 = vmul.f32 1.442695, %v665_v25 }
 0x295   : > { %v2341_v48 = vpop.eup %1445  ;;  %v626_v52 = vpop.xlane.xlu1 %625 }
 0x296   : > { %1455 = vpow2.f32 %v706_v42  ;;  %v666_v54 = vsub.f32 %v2255_v31, %v626_v52  ;;  %v667_v58 = vsub.f32 %v2257_v32, %v626_v52  ;;  %v756_v60 = vadd.f32 %v2341_v48, %v2339_v26 }
 0x297   : > { %1457 = vpow2.f32 %v708_v46 }
 0x298   : > { %v2347_v27 = vpop.eup %1447  ;;  %v710_v29 = vmul.f32 1.442695, %v666_v54  ;;  %v712_v61 = vmul.f32 1.442695, %v667_v58  ;;  %757 = vadd.xlane.f32.xlu1 %v756_v60 }
 0x299   : > { %v2349_v62 = vpop.eup %1449  ;;  %v629_v63 = vpop.xlane.xlu1 %628 }
 0x29a   : > { %1459 = vpow2.f32 %v710_v29  ;;  %v668_v0 = vsub.f32 %v2259_v33, %v629_v63  ;;  %v669_v1 = vsub.f32 %v2263_v35, %v629_v63  ;;  %v759_v31 = vadd.f32 %v2349_v62, %v2347_v27 }
 0x29b   : > { %1461 = vpow2.f32 %v712_v61 }
 0x29c   : > { %v2355_v32 = vpop.eup %1451  ;;  %v714_v2 = vmul.f32 1.442695, %v668_v0  ;;  %v716_v3 = vmul.f32 1.442695, %v669_v1  ;;  %760 = vadd.xlane.f32.xlu0 %v759_v31 }
 0x29d   : > { %v2357_v4 = vpop.eup %1453  ;;  %v632_v5 = vpop.xlane.xlu1 %631 }
 0x29e   : > { %1463 = vpow2.f32 %v714_v2  ;;  %v670_v6 = vsub.f32 %v2267_v37, %v632_v5  ;;  %v671_v7 = vsub.f32 %v2269_v38, %v632_v5  ;;  %v762_v33 = vadd.f32 %v2357_v4, %v2355_v32 }
 0x29f   : > { %1465 = vpow2.f32 %v716_v3 }
 0x2a0   : > { %v2363_v35 = vpop.eup %1455  ;;  %v718_v8 = vmul.f32 1.442695, %v670_v6  ;;  %v720_v9 = vmul.f32 1.442695, %v671_v7  ;;  %763 = vadd.xlane.f32.xlu1 %v762_v33 }
 0x2a1   : > { %v2365_v10 = vpop.eup %1457  ;;  %v635_v11 = vpop.xlane.xlu1 %634 }
 0x2a2   : > { %1467 = vpow2.f32 %v718_v8  ;;  %v672_v12 = vsub.f32 %v2271_v39, %v635_v11  ;;  %v673_v13 = vsub.f32 %v2275_v41, %v635_v11  ;;  %v765_v37 = vadd.f32 %v2365_v10, %v2363_v35 }
 0x2a3   : > { %1469 = vpow2.f32 %v720_v9 }
 0x2a4   : > { %v2371_v38 = vpop.eup %1459  ;;  %v722_v14 = vmul.f32 1.442695, %v672_v12  ;;  %v724_v16 = vmul.f32 1.442695, %v673_v13  ;;  %766 = vadd.xlane.f32.xlu0 %v765_v37 }
 0x2a5   : > { %v2373_v17 = vpop.eup %1461  ;;  %v638_v22 = vpop.xlane.xlu1 %637 }
 0x2a6   : > { %1471 = vpow2.f32 %v722_v14  ;;  %v674_v19 = vsub.f32 %v2279_v43, %v638_v22  ;;  %v675_v20 = vsub.f32 %v2281_v44, %v638_v22  ;;  %v768_v39 = vadd.f32 %v2373_v17, %v2371_v38 }
 0x2a7   : > { %1473 = vpow2.f32 %v724_v16 }
 0x2a8   : > { %v2379_v41 = vpop.eup %1463  ;;  %v726_v21 = vmul.f32 1.442695, %v674_v19  ;;  %v728_v23 = vmul.f32 1.442695, %v675_v20  ;;  %769 = vadd.xlane.f32.xlu1 %v768_v39 }
 0x2a9   : > { %v2381_v30 = vpop.eup %1465  ;;  %v641_v34 = vpop.xlane.xlu1 %640 }
 0x2aa   : > { %1475 = vpow2.f32 %v726_v21  ;;  %v676_v36 = vsub.f32 %v2283_v45, %v641_v34  ;;  %v677_v40 = vsub.f32 %v2287_v47, %v641_v34  ;;  %v771_v43 = vadd.f32 %v2381_v30, %v2379_v41 }
 0x2ab   : > { %1477 = vpow2.f32 %v728_v23 }
 0x2ac   : > { %v2387_v44 = vpop.eup %1467  ;;  %v730_v25 = vmul.f32 1.442695, %v676_v36  ;;  %v732_v42 = vmul.f32 1.442695, %v677_v40  ;;  %772 = vadd.xlane.f32.xlu0 %v771_v43  ;;  %v1431_v40 = vld [vmem:[%s2205_s11 + $0x4] ss:$8 sps:$4 sm:$0xff]  }
 0x2ad   : > { %v2389_v46 = vpop.eup %1469  ;;  %v644_v52 = vpop.xlane.xlu1 %643  ;;  %v1434_v43 = vld [vmem:[%s2205_s11 + $0x14] ss:$8 sps:$4 sm:$0xff]   ;;  %962 = vmatprep.mubr.bf16.mxu0 %v1431_v40 }
 0x2ae   : > { %1479 = vpow2.f32 %v730_v25  ;;  %v678_v54 = vsub.f32 %v2291_v49, %v644_v52  ;;  %v679_v58 = vsub.f32 %v2293_v50, %v644_v52  ;;  %v774_v45 = vadd.f32 %v2389_v46, %v2387_v44  ;;  %970 = vmatprep.mubr.bf16.mxu1 %v1434_v43  ;;  %v979_v25 = vld [vmem:[#allocation2] sm:$0x1] }
 0x2af   : > { %1481 = vpow2.f32 %v732_v42  ;;  %v647_v47 = vpop.xlane.xlu0 %646  ;;  %1291 = vpush %v979_v25 }
 0x2b0   : > { %v2395_v60 = vpop.eup %1471  ;;  %v734_v29 = vmul.f32 1.442695, %v678_v54  ;;  %v736_v61 = vmul.f32 1.442695, %v679_v58  ;;  %775 = vadd.xlane.f32.xlu1 %v774_v45  ;;  %v680_v63 = vsub.f32 %v2295_v51, %v647_v47  ;;  %v681_v0 = vsub.f32 %v2299_v53, %v647_v47 }
 0x2b1   : > { %v2399_v1 = vpop.eup %1473 }
 0x2b2   : > { %1483 = vpow2.f32 %v734_v29  ;;  %v738_v49 = vmul.f32 1.442695, %v680_v63  ;;  %v740_v31 = vmul.f32 1.442695, %v681_v0  ;;  %v777_v50 = vadd.f32 %v2399_v1, %v2395_v60 }
 0x2b3   : > { %1485 = vpow2.f32 %v736_v61 }
 0x2b4   : > { %v2403_v2 = vpop.eup %1475  ;;  %1487 = vpow2.f32 %v738_v49  ;;  %778 = vadd.xlane.f32.xlu0 %v777_v50 }
 0x2b5   : > { %v2405_v3 = vpop.eup %1477  ;;  %1489 = vpow2.f32 %v740_v31  ;;  %v650_v5 = vpop.xlane.xlu1 %649 }
 0x2b6   : > { %v682_v51 = vsub.f32 %v2303_v55, %v650_v5  ;;  %v683_v53 = vsub.f32 %v2305_v56, %v650_v5  ;;  %v780_v6 = vadd.f32 %v2405_v3, %v2403_v2 }
 0x2b7   : > { %v653_v7 = vpop.xlane.xlu0 %652 }
 0x2b8   : > { %v2411_v33 = vpop.eup %1479  ;;  %v742_v8 = vmul.f32 1.442695, %v682_v51  ;;  %v744_v9 = vmul.f32 1.442695, %v683_v53  ;;  %781 = vadd.xlane.f32.xlu1 %v780_v6  ;;  %v684_v11 = vsub.f32 %v2307_v57, %v653_v7  ;;  %v685_v12 = vsub.f32 %v2311_v59, %v653_v7 }
 0x2b9   : > { %v2415_v13 = vpop.eup %1481 }
 0x2ba   : > { %1491 = vpow2.f32 %v742_v8  ;;  %v746_v37 = vmul.f32 1.442695, %v684_v11  ;;  %v748_v55 = vmul.f32 1.442695, %v685_v12  ;;  %v783_v56 = vadd.f32 %v2415_v13, %v2411_v33 }
 0x2bb   : > { %1493 = vpow2.f32 %v744_v9 }
 0x2bc   : > { %v2419_v14 = vpop.eup %1483  ;;  %1495 = vpow2.f32 %v746_v37  ;;  %784 = vadd.xlane.f32.xlu0 %v783_v56 }
 0x2bd   : > { %v2421_v16 = vpop.eup %1485  ;;  %1497 = vpow2.f32 %v748_v55 }
 0x2be   : > { %v2423_v57 = vpop.eup %1487  ;;  %v786_v59 = vadd.f32 %v2421_v16, %v2419_v14 }
 0x2bf   : > { %v2427_v22 = vpop.eup %1489 }
 0x2c0   : > { %787 = vadd.xlane.f32.xlu1 %v786_v59  ;;  %v789_v19 = vadd.f32 %v2427_v22, %v2423_v57 }
 0x2c2   : > { %790 = vadd.xlane.f32.xlu0 %v789_v19 }
 0x2c4   : > { %v2431_v20 = vpop.eup %1491 }
 0x2c5   : > { %v2433_v39 = vpop.eup %1493 }
 0x2c6   : > { %v2435_v21 = vpop.eup %1495  ;;  %v792_v23 = vadd.f32 %v2433_v39, %v2431_v20 }
 0x2c7   : > { %v2439_v34 = vpop.eup %1497 }
 0x2c8   : > { %793 = vadd.xlane.f32.xlu1 %v792_v23  ;;  %v795_v36 = vadd.f32 %v2439_v34, %v2435_v21 }
 0x2ca   : > { %796 = vadd.xlane.f32.xlu0 %v795_v36 }
 0x31d   : > { %v752_v42 = vpop.xlane.xlu1 %751 }
 0x31e   : > { %1499 = vrcp.f32 %v752_v42 }
 0x31f   : > { %v755_v52 = vpop.xlane.xlu0 %754 }
 0x320   : > { %1501 = vrcp.f32 %v755_v52 }
 0x325   : > { %v758_v54 = vpop.xlane.xlu1 %757 }
 0x326   : > { %1503 = vrcp.f32 %v758_v54 }
 0x328   : > { %v1500_v58 = vpop.eup %1499 }
 0x329   : > { %v761_v45 = vpop.xlane.xlu0 %760  ;;  %v831_v47 = vmul.f32 %v1500_v58, %v2325_v18  ;;  %v830_v29 = vmul.f32 %v1500_v58, %v2323_v15 }
 0x32a   : > { %v1502_v61 = vpop.eup %1501  ;;  %1505 = vrcp.f32 %v761_v45 }
 0x32b   : > { %v833_v63 = vmul.f32 %v1502_v61, %v2333_v28  ;;  %863 = vst [vmem:[%s2449_s12 + $0x8] sm:$0xff] %v831_v47  ;;  %v832_v0 = vmul.f32 %v1502_v61, %v2327_v24  ;;  %862 = vst [vmem:[%s2449_s12] sm:$0xff] %v830_v29 }
 0x32d   : > { %v764_v49 = vpop.xlane.xlu1 %763  ;;  %865 = vst [vmem:[%s2449_s12 + $0x18] sm:$0xff] %v833_v63  ;;  %v895_v18 = vpack.c.bf16 %v833_v63, %v831_v47  ;;  %864 = vst [vmem:[%s2449_s12 + $0x10] sm:$0xff] %v832_v0  ;;  %v894_v15 = vpack.c.bf16 %v832_v0, %v830_v29 }
 0x32e   : > { %1507 = vrcp.f32 %v764_v49 }
 0x32f   : > { %930 = vmatprep.subr.bf16.mxu0 %v895_v18  ;;  %1275 = vmatprep.subr.bf16.mxu1 %v895_v18 }
 0x330   : > { %v1504_v28 = vpop.eup %1503  ;;  %931 = vmatpush1.bf16.xpose.msra.mxu0 %v894_v15  ;;  %1283 = vmatpush1.bf16.xpose.msra.mxu1 %v894_v15 }
 0x331   : > { %v767_v31 = vpop.xlane.xlu0 %766  ;;  %v835_v50 = vmul.f32 %v1504_v28, %v2341_v48  ;;  %v834_v24 = vmul.f32 %v1504_v28, %v2339_v26 }
 0x332   : > { %1509 = vrcp.f32 %v767_v31 }
 0x333   : > { %867 = vst [vmem:[%s2449_s12 + $0x28] sm:$0xff] %v835_v50  ;;  %866 = vst [vmem:[%s2449_s12 + $0x20] sm:$0xff] %v834_v24 }
 0x334   : > { %v1506_v5 = vpop.eup %1505 }
 0x335   : > { %v770_v51 = vpop.xlane.xlu1 %769  ;;  %v837_v53 = vmul.f32 %v1506_v5, %v2349_v62  ;;  %v836_v6 = vmul.f32 %v1506_v5, %v2347_v27 }
 0x336   : > { %1511 = vrcp.f32 %v770_v51 }
 0x337   : > { %869 = vst [vmem:[%s2449_s12 + $0x38] sm:$0xff] %v837_v53  ;;  %v897_v7 = vpack.c.bf16 %v837_v53, %v835_v50  ;;  %868 = vst [vmem:[%s2449_s12 + $0x30] sm:$0xff] %v836_v6  ;;  %v896_v8 = vpack.c.bf16 %v836_v6, %v834_v24  ;;  %v1432_v53 = vld [vmem:[%s2205_s11 + $0x10] ss:$8 sps:$4 sm:$0xff]  }
 0x338   : > { %v1508_v9 = vpop.eup %1507 }
 0x339   : > { %932 = vmatprep.subr.bf16.mxu0 %v897_v7  ;;  %1276 = vmatprep.subr.bf16.mxu1 %v897_v7  ;;  %v773_v26 = vpop.xlane.xlu0 %772  ;;  %v839_v48 = vmul.f32 %v1508_v9, %v2357_v4  ;;  %v838_v11 = vmul.f32 %v1508_v9, %v2355_v32 }
 0x33a   : > { %1513 = vrcp.f32 %v773_v26  ;;  %933 = vmatpush1.bf16.xpose.msra.mxu0 %v896_v8  ;;  %1284 = vmatpush1.bf16.xpose.msra.mxu1 %v896_v8 }
 0x33b   : > { %871 = vst [vmem:[%s2449_s12 + $0x48] sm:$0xff] %v839_v48  ;;  %870 = vst [vmem:[%s2449_s12 + $0x40] sm:$0xff] %v838_v11 }
 0x33c   : > { %v1510_v27 = vpop.eup %1509 }
 0x33d   : > { %v776_v62 = vpop.xlane.xlu1 %775  ;;  %v841_v12 = vmul.f32 %v1510_v27, %v2365_v10  ;;  %v840_v37 = vmul.f32 %v1510_v27, %v2363_v35 }
 0x33e   : > { %1515 = vrcp.f32 %v776_v62 }
 0x33f   : > { %873 = vst [vmem:[%s2449_s12 + $0x58] sm:$0xff] %v841_v12  ;;  %v899_v55 = vpack.c.bf16 %v841_v12, %v839_v48  ;;  %872 = vst [vmem:[%s2449_s12 + $0x50] sm:$0xff] %v840_v37  ;;  %v898_v4 = vpack.c.bf16 %v840_v37, %v838_v11 }
 0x340   : > { %v1512_v56 = vpop.eup %1511 }
 0x341   : > { %934 = vmatprep.subr.bf16.mxu0 %v899_v55  ;;  %1277 = vmatprep.subr.bf16.mxu1 %v899_v55  ;;  %v779_v32 = vpop.xlane.xlu0 %778  ;;  %v843_v59 = vmul.f32 %v1512_v56, %v2373_v17  ;;  %v842_v19 = vmul.f32 %v1512_v56, %v2371_v38 }
 0x342   : > { %1517 = vrcp.f32 %v779_v32  ;;  %935 = vmatpush1.bf16.xpose.msra.mxu0 %v898_v4  ;;  %1285 = vmatpush1.bf16.xpose.msra.mxu1 %v898_v4 }
 0x343   : > { %875 = vst [vmem:[%s2449_s12 + $0x68] sm:$0xff] %v843_v59  ;;  %874 = vst [vmem:[%s2449_s12 + $0x60] sm:$0xff] %v842_v19 }
 0x344   : > { %v1514_v35 = vpop.eup %1513 }
 0x345   : > { %v782_v10 = vpop.xlane.xlu1 %781  ;;  %v845_v23 = vmul.f32 %v1514_v35, %v2381_v30  ;;  %v844_v36 = vmul.f32 %v1514_v35, %v2379_v41 }
 0x346   : > { %1519 = vrcp.f32 %v782_v10 }
 0x347   : > { %877 = vst [vmem:[%s2449_s12 + $0x78] sm:$0xff] %v845_v23  ;;  %v901_v40 = vpack.c.bf16 %v845_v23, %v843_v59  ;;  %876 = vst [vmem:[%s2449_s12 + $0x70] sm:$0xff] %v844_v36  ;;  %v900_v17 = vpack.c.bf16 %v844_v36, %v842_v19 }
 0x348   : > { %v1516_v43 = vpop.eup %1515 }
 0x349   : > { %936 = vmatprep.subr.bf16.mxu0 %v901_v40  ;;  %1278 = vmatprep.subr.bf16.mxu1 %v901_v40  ;;  %v785_v38 = vpop.xlane.xlu0 %784  ;;  %v847_v25 = vmul.f32 %v1516_v43, %v2389_v46  ;;  %v846_v42 = vmul.f32 %v1516_v43, %v2387_v44 }
 0x34a   : > { %1521 = vrcp.f32 %v785_v38  ;;  %937 = vmatpush1.bf16.xpose.msra.mxu0 %v900_v17  ;;  %1286 = vmatpush1.bf16.xpose.msra.mxu1 %v900_v17 }
 0x34b   : > { %879 = vst [vmem:[%s2449_s12 + $0x88] sm:$0xff] %v847_v25  ;;  %878 = vst [vmem:[%s2449_s12 + $0x80] sm:$0xff] %v846_v42 }
 0x34c   : > { %v1518_v41 = vpop.eup %1517 }
 0x34d   : > { %v788_v30 = vpop.xlane.xlu1 %787  ;;  %v849_v52 = vmul.f32 %v1518_v41, %v2399_v1  ;;  %v848_v54 = vmul.f32 %v1518_v41, %v2395_v60 }
 0x34e   : > { %1523 = vrcp.f32 %v788_v30 }
 0x34f   : > { %v791_v58 = vpop.xlane.xlu0 %790  ;;  %881 = vst [vmem:[%s2449_s12 + $0x98] sm:$0xff] %v849_v52  ;;  %v903_v45 = vpack.c.bf16 %v849_v52, %v847_v25  ;;  %880 = vst [vmem:[%s2449_s12 + $0x90] sm:$0xff] %v848_v54  ;;  %v902_v46 = vpack.c.bf16 %v848_v54, %v846_v42 }
 0x350   : > { %v1520_v44 = vpop.eup %1519  ;;  %1525 = vrcp.f32 %v791_v58 }
 0x351   : > { %938 = vmatprep.subr.bf16.mxu0 %v903_v45  ;;  %1279 = vmatprep.subr.bf16.mxu1 %v903_v45  ;;  %v851_v47 = vmul.f32 %v1520_v44, %v2405_v3  ;;  %v850_v1 = vmul.f32 %v1520_v44, %v2403_v2 }
 0x352   : > { %939 = vmatpush1.bf16.xpose.msra.mxu0 %v902_v46  ;;  %1287 = vmatpush1.bf16.xpose.msra.mxu1 %v902_v46 }
 0x353   : > { %883 = vst [vmem:[%s2449_s12 + $0xa8] sm:$0xff] %v851_v47  ;;  %882 = vst [vmem:[%s2449_s12 + $0xa0] sm:$0xff] %v850_v1 }
 0x354   : > { %v1522_v60 = vpop.eup %1521 }
 0x355   : > { %v794_v29 = vpop.xlane.xlu1 %793  ;;  %v853_v61 = vmul.f32 %v1522_v60, %v2415_v13  ;;  %v852_v63 = vmul.f32 %v1522_v60, %v2411_v33 }
 0x356   : > { %1527 = vrcp.f32 %v794_v29 }
 0x357   : > { %v797_v0 = vpop.xlane.xlu0 %796  ;;  %885 = vst [vmem:[%s2449_s12 + $0xb8] sm:$0xff] %v853_v61  ;;  %v905_v49 = vpack.c.bf16 %v853_v61, %v851_v47  ;;  %884 = vst [vmem:[%s2449_s12 + $0xb0] sm:$0xff] %v852_v63  ;;  %v904_v3 = vpack.c.bf16 %v852_v63, %v850_v1 }
 0x358   : > { %v1524_v2 = vpop.eup %1523  ;;  %1529 = vrcp.f32 %v797_v0 }
 0x359   : > { %940 = vmatprep.subr.bf16.mxu0 %v905_v49  ;;  %1280 = vmatprep.subr.bf16.mxu1 %v905_v49  ;;  %v855_v18 = vmul.f32 %v1524_v2, %v2421_v16  ;;  %v854_v13 = vmul.f32 %v1524_v2, %v2419_v14 }
 0x35a   : > { %v1526_v15 = vpop.eup %1525  ;;  %941 = vmatpush1.bf16.xpose.msra.mxu0 %v904_v3  ;;  %1288 = vmatpush1.bf16.xpose.msra.mxu1 %v904_v3 }
 0x35b   : > { %v857_v33 = vmul.f32 %v1526_v15, %v2427_v22  ;;  %887 = vst [vmem:[%s2449_s12 + $0xc8] sm:$0xff] %v855_v18  ;;  %v856_v28 = vmul.f32 %v1526_v15, %v2423_v57  ;;  %886 = vst [vmem:[%s2449_s12 + $0xc0] sm:$0xff] %v854_v13 }
 0x35d   : > { %889 = vst [vmem:[%s2449_s12 + $0xd8] sm:$0xff] %v857_v33  ;;  %v907_v31 = vpack.c.bf16 %v857_v33, %v855_v18  ;;  %888 = vst [vmem:[%s2449_s12 + $0xd0] sm:$0xff] %v856_v28  ;;  %v906_v14 = vpack.c.bf16 %v856_v28, %v854_v13 }
 0x35f   : > { %942 = vmatprep.subr.bf16.mxu0 %v907_v31  ;;  %1281 = vmatprep.subr.bf16.mxu1 %v907_v31 }
 0x360   : > { %v1528_v16 = vpop.eup %1527 }
 0x361   : > { %v859_v50 = vmul.f32 %v1528_v16, %v2433_v39  ;;  %v858_v24 = vmul.f32 %v1528_v16, %v2431_v20  ;;  %v1429_v39 = vld [vmem:[%s2205_s11] ss:$8 sps:$4 sm:$0xff]   ;;  %s1655_s11 = sshll.u32 %s1829_s5, 4  ;;  %s1656_s11 = int_to_ptr.vmem [resolvable:$false] %s1655_s11 }
 0x362   : > { %v1530_v22 = vpop.eup %1529  ;;  %943 = vmatpush1.bf16.xpose.msra.mxu0 %v906_v14  ;;  %1289 = vmatpush1.bf16.xpose.msra.mxu1 %v906_v14  ;;  %s1657_s16 = scalar_lea.vmem %s1656_s11, 8192  ;;  %p1658_p8 = scmp.lt.s32.totalorder %s2517_s10, %s1656_s11 }
 0x363   : > { %v861_v57 = vmul.f32 %v1530_v22, %v2439_v34  ;;  %891 = vst [vmem:[%s2449_s12 + $0xe8] sm:$0xff] %v859_v50  ;;  %v860_v5 = vmul.f32 %v1530_v22, %v2435_v21  ;;  %890 = vst [vmem:[%s2449_s12 + $0xe0] sm:$0xff] %v858_v24  ;;  %p1659_p4 = scmp.lt.s32.totalorder %s1657_s16, %s1651_s9 }
 0x365   : > { %893 = vst [vmem:[%s2449_s12 + $0xf8] sm:$0xff] %v861_v57  ;;  %v909_v51 = vpack.c.bf16 %v861_v57, %v859_v50  ;;  %892 = vst [vmem:[%s2449_s12 + $0xf0] sm:$0xff] %v860_v5  ;;  %v908_v20 = vpack.c.bf16 %v860_v5, %v858_v24  ;;  %p1660_p7 = por %p1659_p4, %p1658_p8 }
 0x367   : > { %944 = vmatprep.subr.bf16.mxu0 %v909_v51  ;;  %1282 = vmatprep.subr.bf16.mxu1 %v909_v51  ;;  %p1661_p9 = pnand %p1660_p7, %p1654_p5 }
 0x36a   : > { %945 = vmatpush1.bf16.xpose.msra.mxu0 %v908_v20  ;;  %1290 = vmatpush1.bf16.xpose.msra.mxu1 %v908_v20 }
 0x371   : > { %963 = vmatmul.mubr.bf16.vlgmr.msra.gmra.mrb[32].mxu0 %v1429_v39  ;;  %971 = vmatmul.mubr.bf16.vlgmr.msra.gmra.mrb[0].mxu1 %v1432_v53 }
 0x372   : > { %1664 = shalt.err (!%p1661_p9)
}
 0x373   : > { %s1665_s12 = scalar_lea.hbm %s2522_s1, 4096  ;;  %s1669_s6 = scalar_lea.hbm %s2681_s17, 16384 }
 0x374   : > { %p1666_p10 = scmp.ne.s32.totalorder %s2522_s1, %s1665_s12  ;;  %p1670_p1 = scmp.lt.u32.totalorder %s2522_s1, %s2681_s17 }
 0x375   : > { %p1671_p3 = scmp.lt.u32.totalorder %s1669_s6, %s1665_s12  ;;  %p1673_p13 = scmp.lt.u32.totalorder %s1665_s12, %s2522_s1 }
 0x376   : > { %p1667_p6 = pnand %p1666_p10, %p2682_p12 }
 0x377   : > { %p1672_p11 = por %p1671_p3, %p1670_p1 }
 0x378   : > { %p1668_p2 = pneg %p1667_p6 }
 0x379   : > { %p1674_p0 = por %p1673_p13, %p1672_p11 }
 0x37b   : > { %p1675_p5 = pnand %p1674_p0, %p1668_p2 }
 0x37d   : > { %1678 = shalt.err (!%p1675_p5)
}
 0x37e   : > { %s1830_s29 = smov 256   ;;  %s1831_s9 = smov 16   ;;  %v424_v7 = vld [vmem:[%s2188_s18] sm:$0xff]  ;;  %v426_v8 = vld [vmem:[%s2188_s18 + $0x10] sm:$0xff]  ;;  %v425_v27 = vld [vmem:[%s2188_s18 + $0x8] sm:$0xff] }
 0x37f   : > { %1302 = dma.vmem_to_hbm [thread:$0]  (%p2682_p12), %s2517_s10, 4096, %s2522_s1, %s1000_s28, %s1830_s29, %s1830_s29, %s1831_s9  }
 0x380   : > { %s1292_s5 = spop %1291  ;;  %s1264_s11 = sshll.u32 %s2679_s19, 3  ;;  %v427_v12 = vld [vmem:[%s2188_s18 + $0x18] sm:$0xff] }
 0x381   : > { %v981_v21 = vstv %s1292_s5  ;;  %s1011_s16 = sadd.s32 %s2678_s13, %s1264_s11  ;;  %s414_s12 = scalar_lea.vmem [#allocation11], %s1241_s15 }
 0x382   : > { %s1014_s26 = sshll.u32 %s414_s12, 4  ;;  %s1265_s22 = sshll.u32 %s1011_s16, 7  ;;  %s2558_s26 = int_to_ptr.vmem [resolvable:$true] %s1014_s26 }
 0x383   : > { %s2683_s19 = sld [smem:[#allocation30_spill]]  ;;  %s995_s18 = scalar_lea.sflag [#allocation5], %s2182_s23 }
 0x384   : > { %s1679_s1 = scalar_lea.vmem %s2558_s26, 512  ;;  %s1832_s28 = smov [#allocation11]  }
 0x385   : > { %p1680_p8 = scmp.ne.s32.totalorder %s2558_s26, %s1679_s1  ;;  %s1683_s6 = sshll.u32 %s1832_s28, 4  ;;  %s1684_s6 = int_to_ptr.vmem [resolvable:$false] %s1683_s6 }
 0x386   : > { %s1685_s21 = scalar_lea.vmem %s1684_s6, 1024  ;;  %p1686_p9 = scmp.lt.s32.totalorder %s2558_s26, %s1684_s6 }
 0x387   : > { %p1681_p4 = pnand %p1680_p8, %p2682_p12  ;;  %p1687_p10 = scmp.lt.s32.totalorder %s1685_s21, %s1679_s1 }
 0x389   : > { %s2563_s10 = scalar_lea.hbm %s2683_s19, %s1265_s22  ;;  %p1682_p7 = pneg %p1681_p4 }
 0x38a   : > { %p1688_p6 = por %p1687_p10, %p1686_p9 }
 0x38c   : > { %p1689_p2 = pnand %p1688_p6, %p1682_p7 }
 0x444   : > { %v964_v34 = vpop.f32.mrb[32].mxu0  ;;  %v972_v6 = vpop.f32.mrb[0].mxu1 }
 0x445   : > { %v982_v9 = vmul.f32 %v981_v21, %v964_v34  ;;  %v984_v26 = vmul.f32 %v981_v21, %v972_v6  ;;  %v966_v48 = vpop.f32.mrb[33].mxu0  ;;  %v974_v11 = vpop.f32.mrb[1].mxu1 }
 0x446   : > { %v967_v62 = vpop.f32.mrb[34].mxu0  ;;  %v975_v37 = vpop.f32.mrb[2].mxu1 }
 0x447   : > { %v986_v55 = vadd.f32 %v982_v9, %v424_v7  ;;  %v988_v4 = vadd.f32 %v984_v26, %v426_v8  ;;  %v983_v56 = vmul.f32 %v981_v21, %v967_v62  ;;  %v985_v32 = vmul.f32 %v981_v21, %v975_v37  ;;  %v969_v59 = vpop.f32.mrb[35].mxu0  ;;  %v977_v19 = vpop.f32.mrb[3].mxu1 }
 0x449   : > { %990 = vst [vmem:[%s414_s12] sm:$0xff] %v986_v55  ;;  %992 = vst [vmem:[%s414_s12 + $0x10] sm:$0xff] %v988_v4  ;;  %v987_v35 = vadd.f32 %v983_v56, %v425_v27  ;;  %v989_v10 = vadd.f32 %v985_v32, %v427_v12 }
 0x44b   : > { %991 = vst [vmem:[%s414_s12 + $0x8] sm:$0xff] %v987_v35  ;;  %993 = vst [vmem:[%s414_s12 + $0x18] sm:$0xff] %v989_v10 }
 0x44c   : > { %1692 = shalt.err (!%p1689_p2)
}
 0x44d   : > { %s1693_s20 = scalar_lea.hbm %s2563_s10, 512  ;;  %s1697_s11 = scalar_lea.hbm %s2683_s19, 2048 }
 0x44e   : > { %p1694_p1 = scmp.ne.s32.totalorder %s2563_s10, %s1693_s20  ;;  %p1698_p13 = scmp.lt.u32.totalorder %s2563_s10, %s2683_s19 }
 0x44f   : > { %p1699_p0 = scmp.lt.u32.totalorder %s1697_s11, %s1693_s20  ;;  %p1701_p8 = scmp.lt.u32.totalorder %s1693_s20, %s2563_s10 }
 0x450   : > { %p1695_p3 = pnand %p1694_p1, %p2682_p12 }
 0x451   : > { %p1700_p5 = por %p1699_p0, %p1698_p13 }
 0x452   : > { %p1696_p11 = pneg %p1695_p3 }
 0x453   : > { %p1702_p4 = por %p1701_p8, %p1700_p5 }
 0x455   : > { %p1703_p7 = pnand %p1702_p4, %p1696_p11 }
 0x457   : > { %1706 = shalt.err (!%p1703_p7)
}
 0x458   : > { %s1833_s22 = smov 128   ;;  %s1834_s15 = smov 8  }
 0x459   : > { %1301 = dma.vmem_to_hbm [thread:$0]  (%p2682_p12), %s2558_s26, 512, %s2563_s10, %s995_s18, %s1833_s22, %s1830_s29, %s1834_s15  }
 0x45a PF: > { %s2684_s13 = sld [smem:[#allocation20_spill]]  ;;  %s2685_s1 = sld [smem:[#allocation27_spill]] }
 0x45b   : > { %p1326_p9 = scmp.ge.s32.totalorder %s1817_s8, 2 }
 0x460   : > { %s1048_s28 = sand.u32 1, %s2684_s13   ;;  %p2686_p10 = scmp.ne.s32.totalorder %s2685_s1, 0 }
 0x461   : > { %s1049_s6 = scalar_lea.sflag [#allocation5], %s1048_s28 }
 0x462   : > { %p1319_p6 = pnand %p1326_p9, %p2686_p10 }
 0x464   : > { %1768 = dma.done.wait (!%p1319_p6), %s1049_s6, 512  }
 0x465   : > { %1770 = vsyncadd (!%p1319_p6), %s1049_s6, 4294966784  ;;  %s1058_s21 = scalar_lea.sflag [#allocation13], %s1048_s28 }
 0x466   : > { %1772 = dma.done.wait (!%p1319_p6), %s1058_s21, 4096  }
 0x467   : > { %1774 = vsyncadd (!%p1319_p6), %s1058_s21, 4294963200  ;;  %s34_s8 = sadd.s32 1, %s1817_s8   ;;  %s2687_s27 = sld [smem:[#allocation21_spill]] }
 0x468   : > { %p31_p2 = scmp.ge.s32.totalorder %s34_s8, 6   ;;  %s2688_s29 = sld [smem:[#allocation28_spill]] }
 0x469   : > { %s2689_s10 = sld [smem:[#allocation24_spill]]  ;;  %s2690_s18 = sld [smem:[#allocation25_spill]] }
 0x46a   : > { %s2691_s23 = smov %s1781_s24  ;;  %s2692_s24 = smov %s1785_s25 }
 0x46b   : > { %s2693_s25 = smov %s2080_s14  ;;  %s2694_s26 = smov %s1793_s4 }
 0x46c   : > { %s2697_s28 = smov %s1809_s30  ;;  %33 = sbr.rel (!%p31_p2) target bundleno = 19 (0x13), region = 139 }
 0x46d   : > { %s2695_s4 = smov %s2687_s27 }
 0x46e   : > { %s2696_s27 = smov %s2688_s29  ;;  %s2698_s29 = smov %s1813_s7 }
 0x46f   : > { %s2699_s30 = smov %s2689_s10  ;;  %s2700_s7 = smov %s2690_s18 }
 0x473   :  { %1063 = vsyncpa [#allocation4], 1 }
 0x474   :  { %1065 = vsyncpa [#allocation4 + $0x1], 1 }
 0x475   :  { %1066 = vsyncpa [#allocation7], 1 }
 0x476   :  { %1068 = vsyncpa [#allocation7 + $0x1], 1 }
 0x477   :  { %1069 = vsyncpa [#allocation10], 1 }
 0x478   :  { %1071 = vsyncpa [#allocation10 + $0x1], 1 }
 0x479   :  { %1072 = vsyncpa [#allocation5], 1 }
 0x47a   :  { %1074 = vsyncpa [#allocation5 + $0x1], 1 }
 0x47b   :  { %1075 = vsyncpa [#allocation13], 1 }
 0x47c   :  { %1077 = vsyncpa [#allocation13 + $0x1], 1 }

</bundles_post_ra>
